<compile_context>
chip_gen: v7x
topology: tpu7x:2x2x1
jax: 0.10.0
libtpu: 0.0.40
codegen_flags: <defaults>
</compile_context>

<pallas_src>
import jax
import jax.numpy as jnp
from jax.experimental import pallas as pl
from jax.experimental.pallas import tpu as pltpu


def _round_up(x, m):
    return ((x + m - 1) // m) * m


def _predict_kernel(src_ref, dst_ref, w1a_ref, w1b_ref, b1_ref, w2_ref, b2_ref,
                    out_ref):
    # src_ref/dst_ref: [E, tile_n] bf16 (batch rides the 128-lane axis).
    # hidden = relu(W1a @ src + W1b @ dst + b1) == relu(W1 @ concat), [H, tile_n]
    h = jnp.dot(w1a_ref[...], src_ref[...], preferred_element_type=jnp.float32)
    h = h + jnp.dot(w1b_ref[...], dst_ref[...], preferred_element_type=jnp.float32)
    h = jnp.maximum(h + b1_ref[...], 0.0)          # b1 is [H, 1], broadcasts over lanes

    # out = W2 @ hidden + b2 -> [1, tile_n] lane-dense row (bf16 operands, f32 acc)
    o = jnp.dot(w2_ref[...], h.astype(jnp.bfloat16),
                preferred_element_type=jnp.float32)
    out_ref[...] = (o + b2_ref[0]).astype(out_ref.dtype)


def _choose_tile_n(N, E, vmem_budget_bytes):
    """Batch columns per grid step (lane extent of every block)."""
    # VMEM bytes per batch column consumed by the pipelined streams:
    #   2 inputs x 2 buffers x E x 2B (bf16)  +  output: 2 buffers x 4B (f32)
    per_col = 8 * E + 8
    cap_vmem = max(128, (vmem_budget_bytes // per_col) // 128 * 128)
    # Target >= ~2 MiB of input DMA per grid step (per-step bytes = 4*E*tile_n).
    target = _round_up(max(128, (2 << 20) // (4 * E)), 128)
    # Keep >= ~16 grid steps when the batch supports it (>= ~8 per TC on v7x).
    steps16 = _round_up((N + 15) // 16, 128)
    tile = min(cap_vmem, target, steps16, _round_up(N, 128))
    return max(128, tile)


def predict_layer(src_emb, dst_emb, params, *, tile_n=None,
                  vmem_budget_bytes=40 << 20):
    """Pallas implementation of PredictLayer.forward.

    src_emb, dst_emb : [N, E] float32 (PyTorch layout)
    params           : dict with w1 [H, 2E], b1 [H], w2 [1, H], b2 [1]
                       (natural nn.Linear [out_features, in_features] layout)
    returns          : [N, 1] float32
    """
    N, E = src_emb.shape
    w1, b1, w2, b2 = params["w1"], params["b1"], params["w2"], params["b2"]
    H = w1.shape[0]
    assert w1.shape == (H, 2 * E) and w2.shape == (1, H)

    if tile_n is None:
        tile_n = _choose_tile_n(N, E, vmem_budget_bytes)
    tile_n = max(128, _round_up(int(tile_n), 128))
    grid = (pl.cdiv(N, tile_n),)   # ragged last block: padded reads, masked writes

    # Layout plumbing: cast to bf16 BEFORE transposing so the pass moves half
    # the bytes.  (A real pipeline would emit feature-major bf16 upstream.)
    src_t = src_emb.astype(jnp.bfloat16).T          # [E, N]
    dst_t = dst_emb.astype(jnp.bfloat16).T          # [E, N]

    # Fused concat: split W1 into the halves that multiply src / dst.
    w1a = w1[:, :E].astype(jnp.bfloat16)            # [H, E]
    w1b = w1[:, E:].astype(jnp.bfloat16)            # [H, E]
    b1c = b1.reshape(H, 1).astype(jnp.float32)      # [H, 1]
    w2r = w2.reshape(1, H).astype(jnp.bfloat16)     # [1, H] (bf16 second dot)
    b2s = b2.reshape(1).astype(jnp.float32)         # scalar -> SMEM

    # Explicit scoped-VMEM limit so the raised tile_n is safe on every
    # generation (v5e 16 MiB default scoped, v6e 32 MiB, v7x 64 MiB physical).
    need = (2 * 2 * E * tile_n * 2                  # double-buffered bf16 inputs
            + 2 * tile_n * 4                        # double-buffered f32 output row
            + 2 * H * E * 2 + H * 6 + 512)          # weights / biases + slack
    vmem_limit = int(min(48 << 20, max(2 * need, 16 << 20)))

    cost = pl.CostEstimate(
        flops=2 * N * (2 * E * H + H),
        transcendentals=0,
        bytes_accessed=2 * N * E * 2 + N * 4 + 2 * H * E * 2 + H * 6 + 4,
    )

    out_row = pl.pallas_call(
        _predict_kernel,
        out_shape=jax.ShapeDtypeStruct((1, N), jnp.float32),
        grid_spec=pltpu.PrefetchScalarGridSpec(
            num_scalar_prefetch=0,
            grid=grid,
            in_specs=[
                pl.BlockSpec((E, tile_n), lambda i: (0, i)),        # src tile
                pl.BlockSpec((E, tile_n), lambda i: (0, i)),        # dst tile
                pl.BlockSpec((H, E), lambda i: (0, 0)),             # W1 src half
                pl.BlockSpec((H, E), lambda i: (0, 0)),             # W1 dst half
                pl.BlockSpec((H, 1), lambda i: (0, 0)),             # b1
                pl.BlockSpec((1, H), lambda i: (0, 0)),             # W2 row
                pl.BlockSpec(memory_space=pltpu.MemorySpace.SMEM),  # b2 scalar
            ],
            out_specs=pl.BlockSpec((1, tile_n), lambda i: (0, i)),  # lane dense
        ),
        compiler_params=pltpu.CompilerParams(
            dimension_semantics=("parallel",),      # megacore-shardable on v7x
            vmem_limit_bytes=vmem_limit),
        cost_estimate=cost,
    )(src_t, dst_t, w1a, w1b, b1c, w2r, b2s)

    # Return PyTorch-shaped [N, 1].
    return out_row.reshape(N, 1)


def init_params(key, emb_sz):
    """Deterministic synthetic parameters, PyTorch nn.Linear [out, in] layout."""
    h = emb_sz // 4
    k1, k2, k3, k4 = jax.random.split(key, 4)
    w1 = jax.random.normal(k1, (h, emb_sz * 2), jnp.float32) * 0.1
    b1 = jax.random.normal(k2, (h,), jnp.float32) * 0.1
    w2 = jax.random.normal(k3, (1, h), jnp.float32) * 0.1
    b2 = jax.random.normal(k4, (1,), jnp.float32) * 0.1
    return {"w1": w1, "b1": b1, "w2": w2, "b2": b2}


def reference(src_emb, dst_emb, params, *, match_kernel_precision=False):
    """Pure-JAX reference. match_kernel_precision mirrors the kernel's bf16 path."""
    w1, b1, w2, b2 = params["w1"], params["b1"], params["w2"], params["b2"]
    f32 = jnp.float32
    if match_kernel_precision:
        src_emb = src_emb.astype(jnp.bfloat16).astype(f32)
        dst_emb = dst_emb.astype(jnp.bfloat16).astype(f32)
        w1 = w1.astype(jnp.bfloat16).astype(f32)
        w2 = w2.astype(jnp.bfloat16).astype(f32)
    x = jnp.concatenate([src_emb, dst_emb], axis=1)
    h = jnp.maximum(x @ w1.T + b1, 0.0)
    if match_kernel_precision:
        h = h.astype(jnp.bfloat16).astype(f32)
    return h @ w2.T + b2


if __name__ == "__main__":
    emb_sz = 32          # -> lin1: 64 -> 8, lin2: 8 -> 1

    key = jax.random.PRNGKey(0)
    kp, ks, kd = jax.random.split(key, 3)
    params = init_params(kp, emb_sz)

    # Small primary check (PyTorch-shaped [N, E] inputs); N=16 < 128 exercises
    # the overhanging (fully ragged) single block with masked writes.
    batch = 16
    src = jax.random.normal(ks, (batch, emb_sz), jnp.float32)
    dst = jax.random.normal(kd, (batch, emb_sz), jnp.float32)

    out = jax.block_until_ready(predict_layer(src, dst, params))
    assert out.shape == (batch, 1)
    ref_q = reference(src, dst, params, match_kernel_precision=True)
    assert jnp.allclose(out, ref_q, atol=5e-3, rtol=5e-3), "mismatch vs bf16-operand reference"
    ref_f = reference(src, dst, params)
    assert jnp.allclose(out, ref_f, atol=5e-2, rtol=5e-2), "mismatch vs f32 reference"

    # Ragged multi-step grid, no explicit padding: exercises the cdiv grid and
    # masked writes on the last block.
    batch2 = 300
    ks2, kd2 = jax.random.split(jax.random.PRNGKey(1))
    src2 = jax.random.normal(ks2, (batch2, emb_sz), jnp.float32)
    dst2 = jax.random.normal(kd2, (batch2, emb_sz), jnp.float32)
    out2 = jax.block_until_ready(predict_layer(src2, dst2, params, tile_n=128))
    assert out2.shape == (batch2, 1)
    ref2 = reference(src2, dst2, params, match_kernel_precision=True)
    assert jnp.allclose(out2, ref2, atol=5e-3, rtol=5e-3), "mismatch on ragged batch"

    # Same ragged batch through the default (budget-driven) tile heuristic.
    out3 = jax.block_until_ready(predict_layer(src2, dst2, params))
    assert out3.shape == (batch2, 1)
    assert jnp.allclose(out3, ref2, atol=5e-3, rtol=5e-3), "mismatch with auto tile_n"

    print("KERNEL_OK")
</pallas_src>

<mosaic_0001>
module attributes {stable_mosaic.version = 11 : i64} {
  func.func @_predict_kernel(%arg0: i32, %arg1: memref<32x128xbf16, #tpu.memory_space<vmem>>, %arg2: memref<32x128xbf16, #tpu.memory_space<vmem>>, %arg3: memref<8x32xbf16, #tpu.memory_space<vmem>>, %arg4: memref<8x32xbf16, #tpu.memory_space<vmem>>, %arg5: memref<8x1xf32, #tpu.memory_space<vmem>>, %arg6: memref<1x8xbf16, #tpu.memory_space<vmem>>, %arg7: memref<1xf32, #tpu.memory_space<smem>>, %arg8: memref<1x128xf32, #tpu.memory_space<vmem>>) attributes {dimension_semantics = [#tpu.dimension_semantics<parallel>], iteration_bounds = array<i64: 1>, scalar_prefetch = 0 : i64, scratch_operands = 0 : i64, tpu.core_type = #tpu.core_type<tc>, window_params = [{transform_indices = @transform_0, window_bounds = array<i64: 32, 128>}, {transform_indices = @transform_1, window_bounds = array<i64: 32, 128>}, {pipeline_mode = #tpu.pipeline_mode<synchronous>, transform_indices = @transform_2, window_bounds = array<i64: 8, 32>}, {pipeline_mode = #tpu.pipeline_mode<synchronous>, transform_indices = @transform_3, window_bounds = array<i64: 8, 32>}, {pipeline_mode = #tpu.pipeline_mode<synchronous>, transform_indices = @transform_4, window_bounds = array<i64: 8, 1>}, {pipeline_mode = #tpu.pipeline_mode<synchronous>, transform_indices = @transform_5, window_bounds = array<i64: 1, 8>}, {transform_indices = @transform_6, window_bounds = array<i64: 1>}, {transform_indices = @transform_7, window_bounds = array<i64: 1, 128>}]} {
    %c0 = arith.constant 0 : index
    %c0_0 = arith.constant 0 : index
    %0 = vector.load %arg3[%c0, %c0_0] : memref<8x32xbf16, #tpu.memory_space<vmem>>, vector<8x32xbf16>
    %c0_1 = arith.constant 0 : index
    %c0_2 = arith.constant 0 : index
    %1 = vector.load %arg1[%c0_1, %c0_2] : memref<32x128xbf16, #tpu.memory_space<vmem>>, vector<32x128xbf16>
    %cst = arith.constant dense<0.000000e+00> : vector<8x128xf32>
    %2 = tpu.matmul %0, %1, %cst {dimension_numbers = #tpu.dot_dimension_numbers<[1], [0], [0], [1], [0, 0, 1, 1], [], []>} : vector<8x32xbf16>, vector<32x128xbf16>, vector<8x128xf32> -> vector<8x128xf32>
    %c0_3 = arith.constant 0 : index
    %c0_4 = arith.constant 0 : index
    %3 = vector.load %arg4[%c0_3, %c0_4] : memref<8x32xbf16, #tpu.memory_space<vmem>>, vector<8x32xbf16>
    %c0_5 = arith.constant 0 : index
    %c0_6 = arith.constant 0 : index
    %4 = vector.load %arg2[%c0_5, %c0_6] : memref<32x128xbf16, #tpu.memory_space<vmem>>, vector<32x128xbf16>
    %cst_7 = arith.constant dense<0.000000e+00> : vector<8x128xf32>
    %5 = tpu.matmul %3, %4, %cst_7 {dimension_numbers = #tpu.dot_dimension_numbers<[1], [0], [0], [1], [0, 0, 1, 1], [], []>} : vector<8x32xbf16>, vector<32x128xbf16>, vector<8x128xf32> -> vector<8x128xf32>
    %6 = arith.addf %2, %5 : vector<8x128xf32>
    %c0_8 = arith.constant 0 : index
    %c0_9 = arith.constant 0 : index
    %7 = vector.load %arg5[%c0_8, %c0_9] : memref<8x1xf32, #tpu.memory_space<vmem>>, vector<8x1xf32>
    %8 = vector.broadcast %7 : vector<8x1xf32> to vector<8x128xf32>
    %9 = arith.addf %6, %8 : vector<8x128xf32>
    %cst_10 = arith.constant 0.000000e+00 : f32
    %10 = vector.broadcast %cst_10 : f32 to vector<8x128xf32>
    %11 = arith.maximumf %9, %10 : vector<8x128xf32>
    %c0_11 = arith.constant 0 : index
    %c0_12 = arith.constant 0 : index
    %12 = vector.load %arg6[%c0_11, %c0_12] : memref<1x8xbf16, #tpu.memory_space<vmem>>, vector<1x8xbf16>
    %13 = arith.truncf %11 : vector<8x128xf32> to vector<8x128xbf16>
    %cst_13 = arith.constant dense<0.000000e+00> : vector<1x128xf32>
    %14 = tpu.matmul %12, %13, %cst_13 {dimension_numbers = #tpu.dot_dimension_numbers<[1], [0], [0], [1], [0, 0, 1, 1], [], []>} : vector<1x8xbf16>, vector<8x128xbf16>, vector<1x128xf32> -> vector<1x128xf32>
    %c0_14 = arith.constant 0 : index
    %15 = memref.load %arg7[%c0_14] : memref<1xf32, #tpu.memory_space<smem>>
    %16 = vector.broadcast %15 : f32 to vector<1x128xf32>
    %17 = arith.addf %14, %16 : vector<1x128xf32>
    %c0_15 = arith.constant 0 : index
    %c0_16 = arith.constant 0 : index
    %18 = vector.load %arg8[%c0_15, %c0_16] : memref<1x128xf32, #tpu.memory_space<vmem>>, vector<1x128xf32>
    tpu.vector_store %arg8[%c0_15, %c0_16], %17 {strides = array<i32>} : memref<1x128xf32, #tpu.memory_space<vmem>>, vector<1x128xf32>,
    return
  }
  func.func @transform_0(%arg0: i32) -> (i32, i32) {
    %c0_i32 = arith.constant 0 : i32
    %c0_i32_0 = arith.constant 0 : i32
    return %c0_i32, %arg0 : i32, i32
  }
  func.func @transform_1(%arg0: i32) -> (i32, i32) {
    %c0_i32 = arith.constant 0 : i32
    %c0_i32_0 = arith.constant 0 : i32
    return %c0_i32, %arg0 : i32, i32
  }
  func.func @transform_2(%arg0: i32) -> (i32, i32) {
    %c0_i32 = arith.constant 0 : i32
    %c0_i32_0 = arith.constant 0 : i32
    %c0_i32_1 = arith.constant 0 : i32
    return %c0_i32, %c0_i32_0 : i32, i32
  }
  func.func @transform_3(%arg0: i32) -> (i32, i32) {
    %c0_i32 = arith.constant 0 : i32
    %c0_i32_0 = arith.constant 0 : i32
    %c0_i32_1 = arith.constant 0 : i32
    return %c0_i32, %c0_i32_0 : i32, i32
  }
  func.func @transform_4(%arg0: i32) -> (i32, i32) {
    %c0_i32 = arith.constant 0 : i32
    %c0_i32_0 = arith.constant 0 : i32
    %c0_i32_1 = arith.constant 0 : i32
    return %c0_i32, %c0_i32_0 : i32, i32
  }
  func.func @transform_5(%arg0: i32) -> (i32, i32) {
    %c0_i32 = arith.constant 0 : i32
    %c0_i32_0 = arith.constant 0 : i32
    %c0_i32_1 = arith.constant 0 : i32
    return %c0_i32, %c0_i32_0 : i32, i32
  }
  func.func @transform_6(%arg0: i32) -> i32 {
    %c0_i32 = arith.constant 0 : i32
    %c0_i32_0 = arith.constant 0 : i32
    return %c0_i32 : i32
  }
  func.func @transform_7(%arg0: i32) -> (i32, i32) {
    %c0_i32 = arith.constant 0 : i32
    %c0_i32_0 = arith.constant 0 : i32
    return %c0_i32, %arg0 : i32, i32
  }
}

</mosaic_0001>

<bundles_post_ra>
// kernel: tpu_custom_call.1
= control target key start
LH: loop header
LB: loop body
LE: loop exit
PB: predicated region body
PF: predicated region fallthrough
CT: control target
= control target key end

     0   :  { %v295_v1 = vmov 0.0   ;;  %vm296_vm0 = vmmov 0   ;;  %v297_v6 = vmov 0   ;;  %s381_s0 = inlined_call_operand.vmem [shape: bf16[32,16], index: 0, kind: input, shape index: {}]   ;;  %s382_s1 = inlined_call_operand.vmem [shape: bf16[32,16], index: 1, kind: input, shape index: {}]   ;;  %s383_s2 = inlined_call_operand.vmem [shape: bf16[8,32], index: 2, kind: input, shape index: {}]   ;;  %s384_s3 = inlined_call_operand.vmem [shape: bf16[8,32], index: 3, kind: input, shape index: {}]   ;;  %s385_s4 = inlined_call_operand.vmem [shape: f32[8,1], index: 4, kind: input, shape index: {}]   ;;  %s386_s5 = inlined_call_operand.vmem [shape: bf16[1,8], index: 5, kind: input, shape index: {}]   ;;  %s387_s6 = inlined_call_operand.<no memory space> [shape: f32[1], index: 6, kind: input, shape index: {}]   ;;  %s388_s7 = inlined_call_operand.hbm [shape: f32[1,16], index: 7, kind: output, shape index: {}]  }
   0x1   :  { %v267_v0 = vld [vmem:[%s382_s1] sm:$0xff]   ;;  %240 = vmatprep.subr.bf16.mxu0 %v295_v1  ;;  %248 = vmatprep.subr.bf16.mxu1 %v295_v1  ;;  %v269_v3 = vld [vmem:[%s382_s1 + $0x8] sm:$0xff]  }
   0x2   :  { %v268_v2 = vld [vmem:[%s381_s0] sm:$0xff]   ;;  %241 = vmatpush3.bf16.msra.mxu0 %v267_v0  ;;  %244 = vmatprep.mubr.msk.bf16.mxu0 %vm296_vm0, %v295_v1  ;;  %v270_v4 = vld [vmem:[%s381_s0 + $0x8] sm:$0xff]  }
   0x3   :  { %249 = vmatpush3.bf16.msra.mxu1 %v268_v2  ;;  %242 = vmatprep.subr.bf16.mxu0 %v295_v1  ;;  %v150_v5 = vld [vmem:[%s385_s4] sm:$0xff] }
   0x4   :  { %250 = vmatprep.subr.bf16.mxu1 %v295_v1  ;;  %252 = vmatprep.mubr.msk.bf16.mxu1 %vm296_vm0, %v295_v1 }
   0x5   :  { %266 = vset.pattern.permute.xlu0 %v297_v6 }
   0x6   :  { %13 = vsyncpa [#allocation4], 0  ;;  %243 = vmatpush3.bf16.msra.mxu0 %v269_v3  ;;  %v34_v7 = vld [vmem:[%s384_s3] sm:$0xf]  ;;  %vm51_vm1 = vcmask 261120   ;;  %153 = vperm.xlu0 %266, %v150_v5   ;;  %vm166_vm2 = vcmask 1043456   ;;  %v161_v24 = vstv %s387_s6 }
   0x7   :  { %251 = vmatpush3.bf16.msra.mxu1 %v270_v4  ;;  %v29_v8 = vld [vmem:[%s383_s2] sm:$0xf]  ;;  %256 = vmatprep.subr.bf16.mxu0 %v295_v1  ;;  %vm162_vm3 = vcmask 64512   ;;  %s298_s14 = smov [#allocation3]  }
   0x8   :  { %v158_v23 = vld [vmem:[%s386_s5] sm:$0x1]  ;;  %s217_s15 = sshll.u32 %s298_s14, 4  ;;  %s218_s15 = int_to_ptr.vmem [resolvable:$true] %s217_s15 }
   0x9   :  { %245 = vmatmul.mubr.msk.bf16.vlgmr.msra.gmra.mrb[0].mxu0 %vm51_vm1, %v34_v7  ;;  %s271_s16 = scalar_lea.vmem %s218_s15, 16  ;;  %s275_s17 = scalar_lea.vmem %s218_s15, 32 }
   0xa   :  { %253 = vmatmul.mubr.msk.bf16.vlgmr.msra.gmra.mrb[0].mxu1 %vm51_vm1, %v29_v8  ;;  %258 = vmatprep.mubr.msk.bf16.mxu0 %vm296_vm0, %v295_v1  ;;  %p272_p0 = scmp.ne.s32.totalorder %s218_s15, %s271_s16  ;;  %p276_p1 = scmp.lt.s32.totalorder %s218_s15, %s218_s15 }
   0xb   :  { %p277_p2 = scmp.lt.s32.totalorder %s275_s17, %s271_s16 }
   0xd   :  { %p278_p3 = por %p277_p2, %p276_p1 }
   0xf   :  { %p279_p4 = pnand %p278_p3, %p272_p0 }
  0x85   :  { %v154_v10 = vpop.permute.xlu0 %153 }
  0xdc   :  { %v89_v9 = vpop.f32.mrb[0].mxu0 }
  0xdd   :  { %v144_v11 = vpop.f32.mrb[0].mxu1  ;;  %v246_v12 = vpop.f32.mrb[1].mxu0 }
  0xde   :  { %v145_v13 = vadd.f32 %v144_v11, %v89_v9  ;;  %v254_v14 = vpop.f32.mrb[1].mxu1  ;;  %v92_v15 = vpop.f32.mrb[2].mxu0 }
  0xdf   :  { %v147_v16 = vpop.f32.mrb[2].mxu1  ;;  %v247_v17 = vpop.f32.mrb[3].mxu0 }
  0xe0   :  { %v156_v18 = vadd.f32 %v154_v10, %v145_v13  ;;  %v255_v19 = vpop.f32.mrb[3].mxu1 }
  0xe2   :  { %v157_v20 = vmax.f32 %v156_v18, 0.0 }
  0xe4   :  { %v159_v21 = vpack.c.bf16 %v157_v20, %v157_v20 }
  0xe6   :  { %v168_v22 = vsel %vm166_vm2, %v159_v21, 0 }
  0xe7   :  { %257 = vmatpush3.bf16.msra.mxu0 %v168_v22 }
  0xea   :  { %259 = vmatmul.mubr.msk.bf16.vlgmr.msra.gmra.mrb[4].mxu0 %vm162_vm3, %v158_v23 }
 0x1bd   :  { %v204_v25 = vpop.f32.mrb[4].mxu0 }
 0x1be   :  { %v205_v26 = vadd.f32 %v204_v25, %v161_v24  ;;  %v260_v27 = vpop.f32.mrb[5].mxu0 }
 0x1bf   :  { %v207_v28 = vpop.f32.mrb[6].mxu0 }
 0x1c0   :  { %210 = vst [vmem:[#allocation3] sm:$0x1] %v205_v26  ;;  %v261_v29 = vpop.f32.mrb[7].mxu0 }
 0x1c1   :  { %282 = shalt.err (!%p279_p4)
}
 0x1c2   :  { %s283_s6 = scalar_lea.hbm %s388_s7, 16 }
 0x1c3   :  { %p284_p5 = scmp.ne.s32.totalorder %s388_s7, %s283_s6  ;;  %p287_p6 = scmp.lt.u32.totalorder %s283_s6, %s388_s7 }
 0x1c5   :  { %p289_p7 = pnand %p287_p6, %p284_p5 }
 0x1c7   :  { %292 = shalt.err (!%p289_p7)
}
 0x1c8   :  { %220 = dma.vmem_to_hbm [thread:$0]  %s218_s15, 16, %s388_s7, [#allocation4]  }
 0x1c9   :  { %293 = dma.done.wait [#allocation4], 16  }
 0x1ca   :  { %294 = vsyncadd [#allocation4], 4294967280 }
 0x1cb   :  { %224 = vsyncpa [#allocation4], 1 }

</bundles_post_ra>
